<compile_context>
chip_gen: v7x
topology: tpu7x:2x2x1
jax: 0.10.0
libtpu: 0.0.40
codegen_flags: <defaults>
</compile_context>

<pallas_src>
import functools

import jax
import jax.numpy as jnp
from jax.experimental import pallas as pl
from jax.experimental.pallas import tpu as pltpu


_VMEM_BUDGET = 12 * 1024 * 1024      # double-buffered in+out bytes per grid step


def _ceil8(n):
    return ((n + 7) // 8) * 8


def _sigmoid_eup(x):
    # sigmoid(x) == 0.5 * (1 + tanh(0.5 * x)); tanh lowers to the EUP slot.
    return 0.5 * (1.0 + jnp.tanh(0.5 * x))


# ---------------------------------------------------------------------------
# Main path: pixel-dense layout, pixels on BOTH sublanes and lanes.
# ---------------------------------------------------------------------------
def _conv1x1_sigmoid_pixel_kernel(x_ref, w_ref, b_ref, o_ref, *, nb, cin, cout):
    # x_ref: (Nb, Cin, Rt, 128) VMEM (native dtype)
    # w_ref: (Cout, Cin) SMEM f32      b_ref: (Cout,) SMEM f32
    # o_ref: (Nb, Cout, Rt, 128) VMEM (output dtype)
    for n in range(nb):
        # Load each channel plane once (dense (Rt,128) slabs), compute in f32.
        xs = [x_ref[n, ci].astype(jnp.float32) for ci in range(cin)]
        for co in range(cout):
            acc = b_ref[co] + w_ref[co, 0] * xs[0]      # scalar * vreg FMAs
            for ci in range(1, cin):
                acc = acc + w_ref[co, ci] * xs[ci]
            o_ref[n, co] = _sigmoid_eup(acc).astype(o_ref.dtype)


# ---------------------------------------------------------------------------
# Fallback path (H*W % 128 != 0): channels on sublanes, pixels on lanes.
# ---------------------------------------------------------------------------
def _conv1x1_sigmoid_lane_kernel(x_ref, w_ref, b_ref, o_ref, *, cin):
    # x_ref: (1, Cin, T)   w_ref: (Cout, Cin)   b_ref: (Cout, 1)
    # o_ref: (1, Cout, T)
    x = x_ref[0]                                    # (Cin, T)
    w = w_ref[...]                                  # (Cout, Cin)
    acc = b_ref[...] + w[:, 0:1] * x[0:1, :]
    for ci in range(1, cin):
        acc = acc + w[:, ci:ci + 1] * x[ci:ci + 1, :]
    o_ref[0] = _sigmoid_eup(acc).astype(o_ref.dtype)


@jax.jit
def final_1x1_conv_layer(x_nchw, weight, bias):
    """Forward pass of Final1x1ConvLayer (1x1 conv + sigmoid), NCHW in/out.

    Args:
      x_nchw: (N, Cin, H, W) input (PyTorch NCHW convention).
      weight: (Cout, Cin) 1x1 conv weight (spatial dims squeezed).
      bias:   (Cout,) conv bias.

    Returns:
      (N, Cout, H, W) output, sigmoid(conv1x1(x)).
    """
    N, Cin, H, W = x_nchw.shape
    Cout = weight.shape[0]
    HW = H * W

    w_f32 = weight.astype(jnp.float32)              # (Cout, Cin)
    x_bytes = x_nchw.dtype.itemsize
    out_bytes = x_nchw.dtype.itemsize               # output keeps input dtype

    cparams = pltpu.CompilerParams(
        dimension_semantics=("parallel", "parallel"),
        vmem_limit_bytes=32 * 1024 * 1024)

    if HW % 128 == 0:
        # ---------------- Pixel-dense path ----------------
        R = HW // 128
        x4 = x_nchw.reshape(N, Cin, R, 128)         # free reshape (contiguous)
        b_1d = bias.astype(jnp.float32).reshape(Cout)

        # Double-buffered VMEM bytes per sample per row of 128 pixels.
        row_bytes = 128 * (Cin * x_bytes + Cout * out_bytes) * 2
        rows_cap = max(8, (_VMEM_BUDGET // row_bytes) // 8 * 8)

        if R <= rows_cap:
            r_tile = R                               # full spatial extent
            # Leftover budget -> fold batch items into one block (small maps).
            per_sample = _ceil8(R) * row_bytes       # includes sublane padding
            nb_cap = max(1, _VMEM_BUDGET // per_sample)
            nb = 1
            for d in range(1, N + 1):                # largest divisor of N
                if N % d == 0 and d <= nb_cap:
                    nb = d
        else:
            r_tile = rows_cap                        # multiple of 8
            nb = 1

        grid = (N // nb, pl.cdiv(R, r_tile))         # partial last row-block OK

        kernel = functools.partial(
            _conv1x1_sigmoid_pixel_kernel, nb=nb, cin=Cin, cout=Cout)

        out4 = pl.pallas_call(
            kernel,
            out_shape=jax.ShapeDtypeStruct((N, Cout, R, 128), x_nchw.dtype),
            grid_spec=pltpu.PrefetchScalarGridSpec(
                num_scalar_prefetch=0,
                grid=grid,
                in_specs=[
                    pl.BlockSpec((nb, Cin, r_tile, 128),
                                 lambda b, r: (b, 0, r, 0)),
                    # Tiny params -> SMEM, read as scalars in the kernel.
                    pl.BlockSpec(memory_space=pltpu.MemorySpace.SMEM),
                    pl.BlockSpec(memory_space=pltpu.MemorySpace.SMEM),
                ],
                out_specs=pl.BlockSpec((nb, Cout, r_tile, 128),
                                       lambda b, r: (b, 0, r, 0)),
            ),
            compiler_params=cparams,
        )(x4, w_f32, b_1d)
        return out4.reshape(N, Cout, H, W)

    # ---------------- Fallback path (HW % 128 != 0) ----------------
    x3 = x_nchw.reshape(N, Cin, HW)
    b_col = bias.astype(jnp.float32).reshape(Cout, 1)

    LANE = 128
    # Per-pixel VMEM bytes with sublane padding and real output dtype.
    per_px = (_ceil8(Cin) * x_bytes + _ceil8(Cout) * out_bytes) * 2
    cap = max(LANE, (_VMEM_BUDGET // per_px) // LANE * LANE)
    tile_px = HW if HW <= cap else cap
    grid_px = pl.cdiv(HW, tile_px)                   # partial last block OK

    kernel = functools.partial(_conv1x1_sigmoid_lane_kernel, cin=Cin)
    out3 = pl.pallas_call(
        kernel,
        out_shape=jax.ShapeDtypeStruct((N, Cout, HW), x_nchw.dtype),
        grid_spec=pltpu.PrefetchScalarGridSpec(
            num_scalar_prefetch=0,
            grid=(N, grid_px),
            in_specs=[
                pl.BlockSpec((1, Cin, tile_px), lambda n, j: (n, 0, j)),
                pl.BlockSpec((Cout, Cin), lambda n, j: (0, 0)),
                pl.BlockSpec((Cout, 1), lambda n, j: (0, 0)),
            ],
            out_specs=pl.BlockSpec((1, Cout, tile_px), lambda n, j: (n, 0, j)),
        ),
        compiler_params=cparams,
    )(x3, w_f32, b_col)
    return out3.reshape(N, Cout, H, W)


def _reference(x_nchw, weight, bias):
    # Pure-JAX reference: 1x1 conv == einsum over channels, then sigmoid.
    y = jnp.einsum("nchw,oc->nohw", x_nchw, weight) + bias[None, :, None, None]
    return jax.nn.sigmoid(y)


if __name__ == "__main__":
    key = jax.random.PRNGKey(0)
    k_x, k_w, k_b = jax.random.split(key, 3)

    N, Cin, Cout, Hs, Ws = 2, 4, 3, 16, 16

    x = jax.random.normal(k_x, (N, Cin, Hs, Ws), dtype=jnp.float32)

    # Deterministic parameter init mirroring the PyTorch module:
    #  - conv weight: kaiming_normal_(mode='fan_in') -> N(0, sqrt(2/fan_in)),
    #    fan_in = Cin * 1 * 1 for a 1x1 conv.
    #  - conv bias: PyTorch default U(-1/sqrt(fan_in), 1/sqrt(fan_in)).
    fan_in = Cin * 1 * 1
    w_std = (2.0 / fan_in) ** 0.5
    weight = w_std * jax.random.normal(k_w, (Cout, Cin), dtype=jnp.float32)
    b_bound = 1.0 / (fan_in ** 0.5)
    bias = jax.random.uniform(
        k_b, (Cout,), dtype=jnp.float32, minval=-b_bound, maxval=b_bound)

    out = final_1x1_conv_layer(x, weight, bias)
    out = jax.block_until_ready(out)

    ref = _reference(x, weight, bias)
    assert out.shape == (N, Cout, Hs, Ws)
    assert jnp.allclose(out, ref, atol=1e-5, rtol=1e-5)

    print("KERNEL_OK")
</pallas_src>

<mosaic_0001>
module attributes {stable_mosaic.version = 11 : i64} {
  func.func @_conv1x1_sigmoid_pixel_kernel(%arg0: i32, %arg1: i32, %arg2: memref<2x4x2x128xf32, #tpu.memory_space<vmem>>, %arg3: memref<3x4xf32, #tpu.memory_space<smem>>, %arg4: memref<3xf32, #tpu.memory_space<smem>>, %arg5: memref<2x3x2x128xf32, #tpu.memory_space<vmem>>) attributes {dimension_semantics = [#tpu.dimension_semantics<parallel>, #tpu.dimension_semantics<parallel>], iteration_bounds = array<i64: 1, 1>, scalar_prefetch = 0 : i64, scratch_operands = 0 : i64, tpu.core_type = #tpu.core_type<tc>, window_params = [{transform_indices = @transform_0, window_bounds = array<i64: 2, 4, 2, 128>}, {transform_indices = @transform_1, window_bounds = array<i64: 3, 4>}, {transform_indices = @transform_2, window_bounds = array<i64: 3>}, {transform_indices = @transform_3, window_bounds = array<i64: 2, 3, 2, 128>}]} {
    %c0 = arith.constant 0 : index
    %c0_0 = arith.constant 0 : index
    %c0_1 = arith.constant 0 : index
    %c0_2 = arith.constant 0 : index
    %0 = vector.load %arg2[%c0, %c0_0, %c0_1, %c0_2] : memref<2x4x2x128xf32, #tpu.memory_space<vmem>>, vector<1x1x2x128xf32>
    %1 = vector.shape_cast %0 : vector<1x1x2x128xf32> to vector<2x128xf32>
    %c0_3 = arith.constant 0 : index
    %c1 = arith.constant 1 : index
    %c0_4 = arith.constant 0 : index
    %c0_5 = arith.constant 0 : index
    %2 = vector.load %arg2[%c0_3, %c1, %c0_4, %c0_5] : memref<2x4x2x128xf32, #tpu.memory_space<vmem>>, vector<1x1x2x128xf32>
    %3 = vector.shape_cast %2 : vector<1x1x2x128xf32> to vector<2x128xf32>
    %c0_6 = arith.constant 0 : index
    %c2 = arith.constant 2 : index
    %c0_7 = arith.constant 0 : index
    %c0_8 = arith.constant 0 : index
    %4 = vector.load %arg2[%c0_6, %c2, %c0_7, %c0_8] : memref<2x4x2x128xf32, #tpu.memory_space<vmem>>, vector<1x1x2x128xf32>
    %5 = vector.shape_cast %4 : vector<1x1x2x128xf32> to vector<2x128xf32>
    %c0_9 = arith.constant 0 : index
    %c3 = arith.constant 3 : index
    %c0_10 = arith.constant 0 : index
    %c0_11 = arith.constant 0 : index
    %6 = vector.load %arg2[%c0_9, %c3, %c0_10, %c0_11] : memref<2x4x2x128xf32, #tpu.memory_space<vmem>>, vector<1x1x2x128xf32>
    %7 = vector.shape_cast %6 : vector<1x1x2x128xf32> to vector<2x128xf32>
    %c0_12 = arith.constant 0 : index
    %8 = memref.load %arg4[%c0_12] : memref<3xf32, #tpu.memory_space<smem>>
    %c0_13 = arith.constant 0 : index
    %c0_14 = arith.constant 0 : index
    %9 = memref.load %arg3[%c0_13, %c0_14] : memref<3x4xf32, #tpu.memory_space<smem>>
    %10 = vector.broadcast %9 : f32 to vector<2x128xf32>
    %11 = arith.mulf %10, %1 : vector<2x128xf32>
    %12 = vector.broadcast %8 : f32 to vector<2x128xf32>
    %13 = arith.addf %12, %11 : vector<2x128xf32>
    %c0_15 = arith.constant 0 : index
    %c1_16 = arith.constant 1 : index
    %14 = memref.load %arg3[%c0_15, %c1_16] : memref<3x4xf32, #tpu.memory_space<smem>>
    %15 = vector.broadcast %14 : f32 to vector<2x128xf32>
    %16 = arith.mulf %15, %3 : vector<2x128xf32>
    %17 = arith.addf %13, %16 : vector<2x128xf32>
    %c0_17 = arith.constant 0 : index
    %c2_18 = arith.constant 2 : index
    %18 = memref.load %arg3[%c0_17, %c2_18] : memref<3x4xf32, #tpu.memory_space<smem>>
    %19 = vector.broadcast %18 : f32 to vector<2x128xf32>
    %20 = arith.mulf %19, %5 : vector<2x128xf32>
    %21 = arith.addf %17, %20 : vector<2x128xf32>
    %c0_19 = arith.constant 0 : index
    %c3_20 = arith.constant 3 : index
    %22 = memref.load %arg3[%c0_19, %c3_20] : memref<3x4xf32, #tpu.memory_space<smem>>
    %23 = vector.broadcast %22 : f32 to vector<2x128xf32>
    %24 = arith.mulf %23, %7 : vector<2x128xf32>
    %25 = arith.addf %21, %24 : vector<2x128xf32>
    %cst = arith.constant 5.000000e-01 : f32
    %26 = vector.broadcast %cst : f32 to vector<2x128xf32>
    %27 = arith.mulf %26, %25 : vector<2x128xf32>
    %28 = math.tanh %27 : vector<2x128xf32>
    %cst_21 = arith.constant 1.000000e+00 : f32
    %29 = vector.broadcast %cst_21 : f32 to vector<2x128xf32>
    %30 = arith.addf %29, %28 : vector<2x128xf32>
    %cst_22 = arith.constant 5.000000e-01 : f32
    %31 = vector.broadcast %cst_22 : f32 to vector<2x128xf32>
    %32 = arith.mulf %31, %30 : vector<2x128xf32>
    %c0_23 = arith.constant 0 : index
    %c0_24 = arith.constant 0 : index
    %c0_25 = arith.constant 0 : index
    %c0_26 = arith.constant 0 : index
    %33 = vector.load %arg5[%c0_23, %c0_24, %c0_25, %c0_26] : memref<2x3x2x128xf32, #tpu.memory_space<vmem>>, vector<1x1x2x128xf32>
    %34 = vector.shape_cast %33 : vector<1x1x2x128xf32> to vector<2x128xf32>
    %35 = vector.shape_cast %32 : vector<2x128xf32> to vector<1x1x2x128xf32>
    tpu.vector_store %arg5[%c0_23, %c0_24, %c0_25, %c0_26], %35 {strides = array<i32>} : memref<2x3x2x128xf32, #tpu.memory_space<vmem>>, vector<1x1x2x128xf32>,
    %c1_27 = arith.constant 1 : index
    %36 = memref.load %arg4[%c1_27] : memref<3xf32, #tpu.memory_space<smem>>
    %c1_28 = arith.constant 1 : index
    %c0_29 = arith.constant 0 : index
    %37 = memref.load %arg3[%c1_28, %c0_29] : memref<3x4xf32, #tpu.memory_space<smem>>
    %38 = vector.broadcast %37 : f32 to vector<2x128xf32>
    %39 = arith.mulf %38, %1 : vector<2x128xf32>
    %40 = vector.broadcast %36 : f32 to vector<2x128xf32>
    %41 = arith.addf %40, %39 : vector<2x128xf32>
    %c1_30 = arith.constant 1 : index
    %c1_31 = arith.constant 1 : index
    %42 = memref.load %arg3[%c1_30, %c1_31] : memref<3x4xf32, #tpu.memory_space<smem>>
    %43 = vector.broadcast %42 : f32 to vector<2x128xf32>
    %44 = arith.mulf %43, %3 : vector<2x128xf32>
    %45 = arith.addf %41, %44 : vector<2x128xf32>
    %c1_32 = arith.constant 1 : index
    %c2_33 = arith.constant 2 : index
    %46 = memref.load %arg3[%c1_32, %c2_33] : memref<3x4xf32, #tpu.memory_space<smem>>
    %47 = vector.broadcast %46 : f32 to vector<2x128xf32>
    %48 = arith.mulf %47, %5 : vector<2x128xf32>
    %49 = arith.addf %45, %48 : vector<2x128xf32>
    %c1_34 = arith.constant 1 : index
    %c3_35 = arith.constant 3 : index
    %50 = memref.load %arg3[%c1_34, %c3_35] : memref<3x4xf32, #tpu.memory_space<smem>>
    %51 = vector.broadcast %50 : f32 to vector<2x128xf32>
    %52 = arith.mulf %51, %7 : vector<2x128xf32>
    %53 = arith.addf %49, %52 : vector<2x128xf32>
    %cst_36 = arith.constant 5.000000e-01 : f32
    %54 = vector.broadcast %cst_36 : f32 to vector<2x128xf32>
    %55 = arith.mulf %54, %53 : vector<2x128xf32>
    %56 = math.tanh %55 : vector<2x128xf32>
    %cst_37 = arith.constant 1.000000e+00 : f32
    %57 = vector.broadcast %cst_37 : f32 to vector<2x128xf32>
    %58 = arith.addf %57, %56 : vector<2x128xf32>
    %cst_38 = arith.constant 5.000000e-01 : f32
    %59 = vector.broadcast %cst_38 : f32 to vector<2x128xf32>
    %60 = arith.mulf %59, %58 : vector<2x128xf32>
    %c0_39 = arith.constant 0 : index
    %c1_40 = arith.constant 1 : index
    %c0_41 = arith.constant 0 : index
    %c0_42 = arith.constant 0 : index
    %61 = vector.load %arg5[%c0_39, %c1_40, %c0_41, %c0_42] : memref<2x3x2x128xf32, #tpu.memory_space<vmem>>, vector<1x1x2x128xf32>
    %62 = vector.shape_cast %61 : vector<1x1x2x128xf32> to vector<2x128xf32>
    %63 = vector.shape_cast %60 : vector<2x128xf32> to vector<1x1x2x128xf32>
    tpu.vector_store %arg5[%c0_39, %c1_40, %c0_41, %c0_42], %63 {strides = array<i32>} : memref<2x3x2x128xf32, #tpu.memory_space<vmem>>, vector<1x1x2x128xf32>,
    %c2_43 = arith.constant 2 : index
    %64 = memref.load %arg4[%c2_43] : memref<3xf32, #tpu.memory_space<smem>>
    %c2_44 = arith.constant 2 : index
    %c0_45 = arith.constant 0 : index
    %65 = memref.load %arg3[%c2_44, %c0_45] : memref<3x4xf32, #tpu.memory_space<smem>>
    %66 = vector.broadcast %65 : f32 to vector<2x128xf32>
    %67 = arith.mulf %66, %1 : vector<2x128xf32>
    %68 = vector.broadcast %64 : f32 to vector<2x128xf32>
    %69 = arith.addf %68, %67 : vector<2x128xf32>
    %c2_46 = arith.constant 2 : index
    %c1_47 = arith.constant 1 : index
    %70 = memref.load %arg3[%c2_46, %c1_47] : memref<3x4xf32, #tpu.memory_space<smem>>
    %71 = vector.broadcast %70 : f32 to vector<2x128xf32>
    %72 = arith.mulf %71, %3 : vector<2x128xf32>
    %73 = arith.addf %69, %72 : vector<2x128xf32>
    %c2_48 = arith.constant 2 : index
    %c2_49 = arith.constant 2 : index
    %74 = memref.load %arg3[%c2_48, %c2_49] : memref<3x4xf32, #tpu.memory_space<smem>>
    %75 = vector.broadcast %74 : f32 to vector<2x128xf32>
    %76 = arith.mulf %75, %5 : vector<2x128xf32>
    %77 = arith.addf %73, %76 : vector<2x128xf32>
    %c2_50 = arith.constant 2 : index
    %c3_51 = arith.constant 3 : index
    %78 = memref.load %arg3[%c2_50, %c3_51] : memref<3x4xf32, #tpu.memory_space<smem>>
    %79 = vector.broadcast %78 : f32 to vector<2x128xf32>
    %80 = arith.mulf %79, %7 : vector<2x128xf32>
    %81 = arith.addf %77, %80 : vector<2x128xf32>
    %cst_52 = arith.constant 5.000000e-01 : f32
    %82 = vector.broadcast %cst_52 : f32 to vector<2x128xf32>
    %83 = arith.mulf %82, %81 : vector<2x128xf32>
    %84 = math.tanh %83 : vector<2x128xf32>
    %cst_53 = arith.constant 1.000000e+00 : f32
    %85 = vector.broadcast %cst_53 : f32 to vector<2x128xf32>
    %86 = arith.addf %85, %84 : vector<2x128xf32>
    %cst_54 = arith.constant 5.000000e-01 : f32
    %87 = vector.broadcast %cst_54 : f32 to vector<2x128xf32>
    %88 = arith.mulf %87, %86 : vector<2x128xf32>
    %c0_55 = arith.constant 0 : index
    %c2_56 = arith.constant 2 : index
    %c0_57 = arith.constant 0 : index
    %c0_58 = arith.constant 0 : index
    %89 = vector.load %arg5[%c0_55, %c2_56, %c0_57, %c0_58] : memref<2x3x2x128xf32, #tpu.memory_space<vmem>>, vector<1x1x2x128xf32>
    %90 = vector.shape_cast %89 : vector<1x1x2x128xf32> to vector<2x128xf32>
    %91 = vector.shape_cast %88 : vector<2x128xf32> to vector<1x1x2x128xf32>
    tpu.vector_store %arg5[%c0_55, %c2_56, %c0_57, %c0_58], %91 {strides = array<i32>} : memref<2x3x2x128xf32, #tpu.memory_space<vmem>>, vector<1x1x2x128xf32>,
    %c1_59 = arith.constant 1 : index
    %c0_60 = arith.constant 0 : index
    %c0_61 = arith.constant 0 : index
    %c0_62 = arith.constant 0 : index
    %92 = vector.load %arg2[%c1_59, %c0_60, %c0_61, %c0_62] : memref<2x4x2x128xf32, #tpu.memory_space<vmem>>, vector<1x1x2x128xf32>
    %93 = vector.shape_cast %92 : vector<1x1x2x128xf32> to vector<2x128xf32>
    %c1_63 = arith.constant 1 : index
    %c1_64 = arith.constant 1 : index
    %c0_65 = arith.constant 0 : index
    %c0_66 = arith.constant 0 : index
    %94 = vector.load %arg2[%c1_63, %c1_64, %c0_65, %c0_66] : memref<2x4x2x128xf32, #tpu.memory_space<vmem>>, vector<1x1x2x128xf32>
    %95 = vector.shape_cast %94 : vector<1x1x2x128xf32> to vector<2x128xf32>
    %c1_67 = arith.constant 1 : index
    %c2_68 = arith.constant 2 : index
    %c0_69 = arith.constant 0 : index
    %c0_70 = arith.constant 0 : index
    %96 = vector.load %arg2[%c1_67, %c2_68, %c0_69, %c0_70] : memref<2x4x2x128xf32, #tpu.memory_space<vmem>>, vector<1x1x2x128xf32>
    %97 = vector.shape_cast %96 : vector<1x1x2x128xf32> to vector<2x128xf32>
    %c1_71 = arith.constant 1 : index
    %c3_72 = arith.constant 3 : index
    %c0_73 = arith.constant 0 : index
    %c0_74 = arith.constant 0 : index
    %98 = vector.load %arg2[%c1_71, %c3_72, %c0_73, %c0_74] : memref<2x4x2x128xf32, #tpu.memory_space<vmem>>, vector<1x1x2x128xf32>
    %99 = vector.shape_cast %98 : vector<1x1x2x128xf32> to vector<2x128xf32>
    %c0_75 = arith.constant 0 : index
    %100 = memref.load %arg4[%c0_75] : memref<3xf32, #tpu.memory_space<smem>>
    %c0_76 = arith.constant 0 : index
    %c0_77 = arith.constant 0 : index
    %101 = memref.load %arg3[%c0_76, %c0_77] : memref<3x4xf32, #tpu.memory_space<smem>>
    %102 = vector.broadcast %101 : f32 to vector<2x128xf32>
    %103 = arith.mulf %102, %93 : vector<2x128xf32>
    %104 = vector.broadcast %100 : f32 to vector<2x128xf32>
    %105 = arith.addf %104, %103 : vector<2x128xf32>
    %c0_78 = arith.constant 0 : index
    %c1_79 = arith.constant 1 : index
    %106 = memref.load %arg3[%c0_78, %c1_79] : memref<3x4xf32, #tpu.memory_space<smem>>
    %107 = vector.broadcast %106 : f32 to vector<2x128xf32>
    %108 = arith.mulf %107, %95 : vector<2x128xf32>
    %109 = arith.addf %105, %108 : vector<2x128xf32>
    %c0_80 = arith.constant 0 : index
    %c2_81 = arith.constant 2 : index
    %110 = memref.load %arg3[%c0_80, %c2_81] : memref<3x4xf32, #tpu.memory_space<smem>>
    %111 = vector.broadcast %110 : f32 to vector<2x128xf32>
    %112 = arith.mulf %111, %97 : vector<2x128xf32>
    %113 = arith.addf %109, %112 : vector<2x128xf32>
    %c0_82 = arith.constant 0 : index
    %c3_83 = arith.constant 3 : index
    %114 = memref.load %arg3[%c0_82, %c3_83] : memref<3x4xf32, #tpu.memory_space<smem>>
    %115 = vector.broadcast %114 : f32 to vector<2x128xf32>
    %116 = arith.mulf %115, %99 : vector<2x128xf32>
    %117 = arith.addf %113, %116 : vector<2x128xf32>
    %cst_84 = arith.constant 5.000000e-01 : f32
    %118 = vector.broadcast %cst_84 : f32 to vector<2x128xf32>
    %119 = arith.mulf %118, %117 : vector<2x128xf32>
    %120 = math.tanh %119 : vector<2x128xf32>
    %cst_85 = arith.constant 1.000000e+00 : f32
    %121 = vector.broadcast %cst_85 : f32 to vector<2x128xf32>
    %122 = arith.addf %121, %120 : vector<2x128xf32>
    %cst_86 = arith.constant 5.000000e-01 : f32
    %123 = vector.broadcast %cst_86 : f32 to vector<2x128xf32>
    %124 = arith.mulf %123, %122 : vector<2x128xf32>
    %c1_87 = arith.constant 1 : index
    %c0_88 = arith.constant 0 : index
    %c0_89 = arith.constant 0 : index
    %c0_90 = arith.constant 0 : index
    %125 = vector.load %arg5[%c1_87, %c0_88, %c0_89, %c0_90] : memref<2x3x2x128xf32, #tpu.memory_space<vmem>>, vector<1x1x2x128xf32>
    %126 = vector.shape_cast %125 : vector<1x1x2x128xf32> to vector<2x128xf32>
    %127 = vector.shape_cast %124 : vector<2x128xf32> to vector<1x1x2x128xf32>
    tpu.vector_store %arg5[%c1_87, %c0_88, %c0_89, %c0_90], %127 {strides = array<i32>} : memref<2x3x2x128xf32, #tpu.memory_space<vmem>>, vector<1x1x2x128xf32>,
    %c1_91 = arith.constant 1 : index
    %128 = memref.load %arg4[%c1_91] : memref<3xf32, #tpu.memory_space<smem>>
    %c1_92 = arith.constant 1 : index
    %c0_93 = arith.constant 0 : index
    %129 = memref.load %arg3[%c1_92, %c0_93] : memref<3x4xf32, #tpu.memory_space<smem>>
    %130 = vector.broadcast %129 : f32 to vector<2x128xf32>
    %131 = arith.mulf %130, %93 : vector<2x128xf32>
    %132 = vector.broadcast %128 : f32 to vector<2x128xf32>
    %133 = arith.addf %132, %131 : vector<2x128xf32>
    %c1_94 = arith.constant 1 : index
    %c1_95 = arith.constant 1 : index
    %134 = memref.load %arg3[%c1_94, %c1_95] : memref<3x4xf32, #tpu.memory_space<smem>>
    %135 = vector.broadcast %134 : f32 to vector<2x128xf32>
    %136 = arith.mulf %135, %95 : vector<2x128xf32>
    %137 = arith.addf %133, %136 : vector<2x128xf32>
    %c1_96 = arith.constant 1 : index
    %c2_97 = arith.constant 2 : index
    %138 = memref.load %arg3[%c1_96, %c2_97] : memref<3x4xf32, #tpu.memory_space<smem>>
    %139 = vector.broadcast %138 : f32 to vector<2x128xf32>
    %140 = arith.mulf %139, %97 : vector<2x128xf32>
    %141 = arith.addf %137, %140 : vector<2x128xf32>
    %c1_98 = arith.constant 1 : index
    %c3_99 = arith.constant 3 : index
    %142 = memref.load %arg3[%c1_98, %c3_99] : memref<3x4xf32, #tpu.memory_space<smem>>
    %143 = vector.broadcast %142 : f32 to vector<2x128xf32>
    %144 = arith.mulf %143, %99 : vector<2x128xf32>
    %145 = arith.addf %141, %144 : vector<2x128xf32>
    %cst_100 = arith.constant 5.000000e-01 : f32
    %146 = vector.broadcast %cst_100 : f32 to vector<2x128xf32>
    %147 = arith.mulf %146, %145 : vector<2x128xf32>
    %148 = math.tanh %147 : vector<2x128xf32>
    %cst_101 = arith.constant 1.000000e+00 : f32
    %149 = vector.broadcast %cst_101 : f32 to vector<2x128xf32>
    %150 = arith.addf %149, %148 : vector<2x128xf32>
    %cst_102 = arith.constant 5.000000e-01 : f32
    %151 = vector.broadcast %cst_102 : f32 to vector<2x128xf32>
    %152 = arith.mulf %151, %150 : vector<2x128xf32>
    %c1_103 = arith.constant 1 : index
    %c1_104 = arith.constant 1 : index
    %c0_105 = arith.constant 0 : index
    %c0_106 = arith.constant 0 : index
    %153 = vector.load %arg5[%c1_103, %c1_104, %c0_105, %c0_106] : memref<2x3x2x128xf32, #tpu.memory_space<vmem>>, vector<1x1x2x128xf32>
    %154 = vector.shape_cast %153 : vector<1x1x2x128xf32> to vector<2x128xf32>
    %155 = vector.shape_cast %152 : vector<2x128xf32> to vector<1x1x2x128xf32>
    tpu.vector_store %arg5[%c1_103, %c1_104, %c0_105, %c0_106], %155 {strides = array<i32>} : memref<2x3x2x128xf32, #tpu.memory_space<vmem>>, vector<1x1x2x128xf32>,
    %c2_107 = arith.constant 2 : index
    %156 = memref.load %arg4[%c2_107] : memref<3xf32, #tpu.memory_space<smem>>
    %c2_108 = arith.constant 2 : index
    %c0_109 = arith.constant 0 : index
    %157 = memref.load %arg3[%c2_108, %c0_109] : memref<3x4xf32, #tpu.memory_space<smem>>
    %158 = vector.broadcast %157 : f32 to vector<2x128xf32>
    %159 = arith.mulf %158, %93 : vector<2x128xf32>
    %160 = vector.broadcast %156 : f32 to vector<2x128xf32>
    %161 = arith.addf %160, %159 : vector<2x128xf32>
    %c2_110 = arith.constant 2 : index
    %c1_111 = arith.constant 1 : index
    %162 = memref.load %arg3[%c2_110, %c1_111] : memref<3x4xf32, #tpu.memory_space<smem>>
    %163 = vector.broadcast %162 : f32 to vector<2x128xf32>
    %164 = arith.mulf %163, %95 : vector<2x128xf32>
    %165 = arith.addf %161, %164 : vector<2x128xf32>
    %c2_112 = arith.constant 2 : index
    %c2_113 = arith.constant 2 : index
    %166 = memref.load %arg3[%c2_112, %c2_113] : memref<3x4xf32, #tpu.memory_space<smem>>
    %167 = vector.broadcast %166 : f32 to vector<2x128xf32>
    %168 = arith.mulf %167, %97 : vector<2x128xf32>
    %169 = arith.addf %165, %168 : vector<2x128xf32>
    %c2_114 = arith.constant 2 : index
    %c3_115 = arith.constant 3 : index
    %170 = memref.load %arg3[%c2_114, %c3_115] : memref<3x4xf32, #tpu.memory_space<smem>>
    %171 = vector.broadcast %170 : f32 to vector<2x128xf32>
    %172 = arith.mulf %171, %99 : vector<2x128xf32>
    %173 = arith.addf %169, %172 : vector<2x128xf32>
    %cst_116 = arith.constant 5.000000e-01 : f32
    %174 = vector.broadcast %cst_116 : f32 to vector<2x128xf32>
    %175 = arith.mulf %174, %173 : vector<2x128xf32>
    %176 = math.tanh %175 : vector<2x128xf32>
    %cst_117 = arith.constant 1.000000e+00 : f32
    %177 = vector.broadcast %cst_117 : f32 to vector<2x128xf32>
    %178 = arith.addf %177, %176 : vector<2x128xf32>
    %cst_118 = arith.constant 5.000000e-01 : f32
    %179 = vector.broadcast %cst_118 : f32 to vector<2x128xf32>
    %180 = arith.mulf %179, %178 : vector<2x128xf32>
    %c1_119 = arith.constant 1 : index
    %c2_120 = arith.constant 2 : index
    %c0_121 = arith.constant 0 : index
    %c0_122 = arith.constant 0 : index
    %181 = vector.load %arg5[%c1_119, %c2_120, %c0_121, %c0_122] : memref<2x3x2x128xf32, #tpu.memory_space<vmem>>, vector<1x1x2x128xf32>
    %182 = vector.shape_cast %181 : vector<1x1x2x128xf32> to vector<2x128xf32>
    %183 = vector.shape_cast %180 : vector<2x128xf32> to vector<1x1x2x128xf32>
    tpu.vector_store %arg5[%c1_119, %c2_120, %c0_121, %c0_122], %183 {strides = array<i32>} : memref<2x3x2x128xf32, #tpu.memory_space<vmem>>, vector<1x1x2x128xf32>,
    return
  }
  func.func @transform_0(%arg0: i32, %arg1: i32) -> (i32, i32, i32, i32) {
    %c0_i32 = arith.constant 0 : i32
    %c0_i32_0 = arith.constant 0 : i32
    %c0_i32_1 = arith.constant 0 : i32
    return %arg0, %c0_i32, %arg1, %c0_i32_0 : i32, i32, i32, i32
  }
  func.func @transform_1(%arg0: i32, %arg1: i32) -> (i32, i32) {
    %c0_i32 = arith.constant 0 : i32
    %c0_i32_0 = arith.constant 0 : i32
    %c0_i32_1 = arith.constant 0 : i32
    return %c0_i32, %c0_i32_0 : i32, i32
  }
  func.func @transform_2(%arg0: i32, %arg1: i32) -> i32 {
    %c0_i32 = arith.constant 0 : i32
    %c0_i32_0 = arith.constant 0 : i32
    return %c0_i32 : i32
  }
  func.func @transform_3(%arg0: i32, %arg1: i32) -> (i32, i32, i32, i32) {
    %c0_i32 = arith.constant 0 : i32
    %c0_i32_0 = arith.constant 0 : i32
    %c0_i32_1 = arith.constant 0 : i32
    return %arg0, %c0_i32, %arg1, %c0_i32_0 : i32, i32, i32, i32
  }
}

</mosaic_0001>

<bundles_post_ra>
// kernel: final_1x1_conv_layer.1
= control target key start
LH: loop header
LB: loop body
LE: loop exit
PB: predicated region body
PF: predicated region fallthrough
CT: control target
= control target key end

     0   :  { %8 = vsyncpa [#allocation3], 0  ;;  %s395_s0 = inlined_call_operand.vmem [shape: f32[2,4,2,128], index: 0, kind: input, shape index: {}]   ;;  %s396_s1 = inlined_call_operand.vmem [shape: f32[3,4], index: 1, kind: input, shape index: {}]   ;;  %s397_s2 = inlined_call_operand.vmem [shape: f32[3], index: 2, kind: input, shape index: {}]   ;;  %s398_s3 = inlined_call_operand.vmem [shape: f32[2,3,2,128], index: 3, kind: output, shape index: {}]  }
   0x1   :  { %s18_s14 = sshll.u32 %s396_s1, 4  ;;  %s19_s14 = int_to_ptr.vmem [resolvable:$true] %s18_s14 }
   0x2   :  { %9 = vsyncpa [#allocation5], 0  ;;  %s28_s17 = sshll.u32 %s397_s2, 4  ;;  %s255_s18 = scalar_lea.vmem %s19_s14, 64  ;;  %s29_s17 = int_to_ptr.vmem [resolvable:$true] %s28_s17 }
   0x3   :  { %p256_p0 = scmp.ne.s32.totalorder %s19_s14, %s255_s18  ;;  %p260_p1 = scmp.lt.s32.totalorder %s19_s14, %s19_s14 }
   0x4   :  { %p261_p2 = scmp.lt.s32.totalorder %s255_s18, %s255_s18 }
   0x6   :  { %p262_p3 = por %p261_p2, %p260_p1 }
   0x8   :  { %p263_p4 = pnand %p262_p3, %p256_p0 }
   0xa   :  { %266 = shalt.err (!%p263_p4)
}
   0xb   :  { %s283_s19 = smov [#allocation2]   ;;  %s267_s20 = scalar_lea.vmem %s29_s17, 16 }
   0xc   :  { %21 = dma.vmem_to_smem %s19_s14, 64, %s283_s19, [#allocation3]  }
   0xd   :  { %p268_p5 = scmp.ne.s32.totalorder %s29_s17, %s267_s20  ;;  %p272_p6 = scmp.lt.s32.totalorder %s29_s17, %s29_s17 }
   0xe   :  { %p273_p7 = scmp.lt.s32.totalorder %s267_s20, %s267_s20 }
  0x10   :  { %p274_p8 = por %p273_p7, %p272_p6 }
  0x12   :  { %p275_p9 = pnand %p274_p8, %p268_p5 }
  0x14   :  { %278 = shalt.err (!%p275_p9)
}
  0x15   :  { %s284_s1 = smov [#allocation4]  }
  0x16   :  { %31 = dma.vmem_to_smem %s29_s17, 16, %s284_s1, [#allocation5]  }
  0x17   :  { %279 = dma.done.wait [#allocation3], 64  }
  0x18   :  { %280 = vsyncadd [#allocation3], 4294967232 }
  0x19   :  { %281 = dma.done.wait [#allocation5], 16  }
  0x1a   :  { %282 = vsyncadd [#allocation5], 4294967280 }
  0x1b   :  { %38 = sfence }
  0x1c   :  { %s311_s2 = sld [smem:[#allocation4]]  ;;  %s313_s22 = sld [smem:[#allocation2 + $0x1]]  ;;  %v39_v0 = vld [vmem:[%s395_s0] sm:$0x3]  ;;  %v203_v1 = vld [vmem:[%s395_s0 + $0x2] sm:$0x3] }
  0x1d   :  { %s47_s21 = sld [smem:[#allocation2]]  ;;  %s315_s23 = sld [smem:[#allocation2 + $0x2]]  ;;  %v204_v2 = vld [vmem:[%s395_s0 + $0x4] sm:$0x3]  ;;  %v221_v3 = vld [vmem:[%s395_s0 + $0x8] sm:$0x3] }
  0x1e   :  { %s320_s26 = sld [smem:[#allocation2 + $0x3]]  ;;  %s322_s27 = sld [smem:[#allocation4 + $0x1]]  ;;  %v205_v6 = vld [vmem:[%s395_s0 + $0x6] sm:$0x3]  ;;  %v222_v30 = vld [vmem:[%s395_s0 + $0xa] sm:$0x3] }
  0x1f   :  { %s327_s30 = sld [smem:[#allocation2 + $0x80]]  ;;  %s329_s4 = sld [smem:[#allocation2 + $0x81]]  ;;  %v223_v31 = vld [vmem:[%s395_s0 + $0xc] sm:$0x3]  ;;  %v224_v40 = vld [vmem:[%s395_s0 + $0xe] sm:$0x3] }
  0x20   :  { %s334_s7 = sld [smem:[#allocation2 + $0x82]]  ;;  %s336_s8 = sld [smem:[#allocation2 + $0x83]] }
  0x21   :  { %s338_s9 = sld [smem:[#allocation4 + $0x2]]  ;;  %s340_s10 = sld [smem:[#allocation2 + $0x100]] }
  0x22   :  { %v50_v5 = vstv %s311_s2  ;;  %s346_s13 = sld [smem:[#allocation2 + $0x101]]  ;;  %s348_s14 = sld [smem:[#allocation2 + $0x102]]  ;;  %v53_v8 = vstv %s313_s22 }
  0x23   :  { %v48_v4 = vstv %s47_s21  ;;  %v57_v9 = vstv %s315_s23  ;;  %s355_s17 = sld [smem:[#allocation2 + $0x103]]  ;;  %v54_v10 = vmul.f32 %v203_v1, %v53_v8  ;;  %v133_v43 = vmul.f32 %v222_v30, %v53_v8 }
  0x24   :  { %v49_v7 = vmul.f32 %v48_v4, %v39_v0  ;;  %v58_v11 = vmul.f32 %v204_v2, %v57_v9  ;;  %v61_v12 = vstv %s320_s26  ;;  %v128_v13 = vmul.f32 %v221_v3, %v48_v4 }
  0x25   :  { %v71_v15 = vstv %s327_s30  ;;  %v73_v16 = vstv %s322_s27  ;;  %v76_v17 = vstv %s329_s4  ;;  %v62_v18 = vmul.f32 %v205_v6, %v61_v12 }
  0x26   :  { %v51_v14 = vadd.f32 %v50_v5, %v49_v7  ;;  %v72_v19 = vmul.f32 %v71_v15, %v39_v0  ;;  %v77_v20 = vmul.f32 %v203_v1, %v76_v17  ;;  %v80_v21 = vstv %s334_s7 }
  0x27   :  { %v81_v23 = vmul.f32 %v204_v2, %v80_v21  ;;  %v84_v24 = vstv %s336_s8  ;;  %v95_v25 = vstv %s340_s10  ;;  %v97_v28 = vstv %s338_s9 }
  0x28   :  { %v55_v22 = vadd.f32 %v54_v10, %v51_v14  ;;  %v74_v26 = vadd.f32 %v73_v16, %v72_v19  ;;  %v96_v27 = vmul.f32 %v95_v25, %v39_v0  ;;  %v100_v29 = vstv %s346_s13 }
  0x29   :  { %v101_v33 = vmul.f32 %v203_v1, %v100_v29  ;;  %v104_v34 = vstv %s348_s14  ;;  %v108_v35 = vstv %s355_s17  ;;  %v85_v37 = vmul.f32 %v205_v6, %v84_v24 }
  0x2a   :  { %v59_v32 = vadd.f32 %v58_v11, %v55_v22  ;;  %v78_v36 = vadd.f32 %v77_v20, %v74_v26  ;;  %v98_v38 = vadd.f32 %v97_v28, %v96_v27  ;;  %v105_v39 = vmul.f32 %v204_v2, %v104_v34 }
  0x2b   :  { %v130_v42 = vadd.f32 %v128_v13, %v50_v5  ;;  %v137_v44 = vmul.f32 %v223_v31, %v57_v9  ;;  %v109_v47 = vmul.f32 %v205_v6, %v108_v35  ;;  %v152_v48 = vmul.f32 %v221_v3, %v71_v15 }
  0x2c   :  { %v63_v41 = vadd.f32 %v62_v18, %v59_v32  ;;  %v82_v45 = vadd.f32 %v81_v23, %v78_v36  ;;  %v102_v46 = vadd.f32 %v101_v33, %v98_v38  ;;  %v141_v51 = vmul.f32 %v224_v40, %v61_v12 }
  0x2d   :  { %v134_v50 = vadd.f32 %v133_v43, %v130_v42  ;;  %v157_v52 = vmul.f32 %v222_v30, %v76_v17  ;;  %v154_v55 = vadd.f32 %v152_v48, %v73_v16  ;;  %v161_v56 = vmul.f32 %v223_v31, %v80_v21 }
  0x2e   :  { %v64_v49 = vmul.f32 0.5, %v63_v41  ;;  %v86_v53 = vadd.f32 %v85_v37, %v82_v45  ;;  %v106_v54 = vadd.f32 %v105_v39, %v102_v46  ;;  %v176_v58 = vmul.f32 %v221_v3, %v95_v25 }
  0x2f   :  { %v138_v57 = vadd.f32 %v137_v44, %v134_v50  ;;  %v181_v59 = vmul.f32 %v222_v30, %v100_v29  ;;  %v158_v62 = vadd.f32 %v157_v52, %v154_v55  ;;  %v165_v63 = vmul.f32 %v224_v40, %v84_v24 }
  0x30   :  { %243 = vtanh.f32 %v64_v49  ;;  %v87_v60 = vmul.f32 0.5, %v86_v53  ;;  %v110_v61 = vadd.f32 %v109_v47, %v106_v54  ;;  %v178_v1 = vadd.f32 %v176_v58, %v97_v28 }
  0x31   :  { %v142_v0 = vadd.f32 %v141_v51, %v138_v57  ;;  %v185_v2 = vmul.f32 %v223_v31, %v104_v34  ;;  %v162_v5 = vadd.f32 %v161_v56, %v158_v62  ;;  %v189_v8 = vmul.f32 %v224_v40, %v108_v35 }
  0x32   :  { %245 = vtanh.f32 %v87_v60  ;;  %v111_v4 = vmul.f32 0.5, %v110_v61  ;;  %v182_v7 = vadd.f32 %v181_v59, %v178_v1 }
  0x33   :  { %v143_v6 = vmul.f32 0.5, %v142_v0  ;;  %v166_v9 = vadd.f32 %v165_v63, %v162_v5 }
  0x34   :  { %247 = vtanh.f32 %v111_v4  ;;  %v186_v10 = vadd.f32 %v185_v2, %v182_v7 }
  0x35   :  { %249 = vtanh.f32 %v143_v6  ;;  %v167_v11 = vmul.f32 0.5, %v166_v9 }
  0x36   :  { %v190_v3 = vadd.f32 %v189_v8, %v186_v10 }
  0x37   :  { %251 = vtanh.f32 %v167_v11 }
  0x38   :  { %v191_v13 = vmul.f32 0.5, %v190_v3 }
  0x3a   :  { %v244_v12 = vpop.eup %243  ;;  %253 = vtanh.f32 %v191_v13 }
  0x3b   :  { %v66_v14 = vadd.f32 1.0, %v244_v12 }
  0x3c   :  { %v246_v15 = vpop.eup %245 }
  0x3d   :  { %v67_v16 = vmul.f32 0.5, %v66_v14  ;;  %v89_v17 = vadd.f32 1.0, %v246_v15 }
  0x3e   :  { %v248_v18 = vpop.eup %247 }
  0x3f   :  { %68 = vst [vmem:[%s398_s3] sm:$0x3] %v67_v16  ;;  %v250_v19 = vpop.eup %249  ;;  %v90_v20 = vmul.f32 0.5, %v89_v17  ;;  %v113_v21 = vadd.f32 1.0, %v248_v18 }
  0x40   :  { %v145_v22 = vadd.f32 1.0, %v250_v19 }
  0x41   :  { %214 = vst [vmem:[%s398_s3 + $0x2] sm:$0x3] %v90_v20  ;;  %v114_v23 = vmul.f32 0.5, %v113_v21  ;;  %v252_v24 = vpop.eup %251 }
  0x42   :  { %v146_v25 = vmul.f32 0.5, %v145_v22  ;;  %v169_v26 = vadd.f32 1.0, %v252_v24 }
  0x43   :  { %220 = vst [vmem:[%s398_s3 + $0x4] sm:$0x3] %v114_v23 }
  0x44   :  { %228 = vst [vmem:[%s398_s3 + $0x6] sm:$0x3] %v146_v25  ;;  %v254_v27 = vpop.eup %253  ;;  %v170_v28 = vmul.f32 0.5, %v169_v26 }
  0x45   :  { %v193_v29 = vadd.f32 1.0, %v254_v27 }
  0x46   :  { %234 = vst [vmem:[%s398_s3 + $0x8] sm:$0x3] %v170_v28 }
  0x47   :  { %v194_v30 = vmul.f32 0.5, %v193_v29 }
  0x49   :  { %240 = vst [vmem:[%s398_s3 + $0xa] sm:$0x3] %v194_v30 }
  0x4a   :  { %201 = vsyncpa [#allocation3], 1 }
  0x4b   :  { %202 = vsyncpa [#allocation5], 1 }

</bundles_post_ra>
